<compile_context>
chip_gen: v7x
topology: tpu7x:2x2x1
jax: 0.10.0
libtpu: 0.0.40
codegen_flags: <defaults>
</compile_context>

<pallas_src>
import math
import functools

import jax
import jax.numpy as jnp
from jax.experimental import pallas as pl
from jax.experimental.pallas import tpu as pltpu


# ----------------------------- kernels ------------------------------------ #

def _pe_add_kernel(x_ref, pe_ref, o_ref):
    """Eval mode: o = x + pe.  All refs are (seq_tile, B*D) VMEM blocks."""
    o_ref[...] = (x_ref[...] + pe_ref[...]).astype(o_ref.dtype)


def _pe_add_dropout_kernel(x_ref, pe_ref, bits_ref, o_ref, *, threshold, scale):
    """Train mode: inverted dropout on (x + pe).

    bits_ref holds uniform uint32 random bits; an element is dropped when
    bits < threshold, i.e. with probability p = threshold / 2**32.
    """
    y = x_ref[...] + pe_ref[...]
    keep = bits_ref[...] >= jnp.uint32(threshold)
    y = jnp.where(keep, y * jnp.asarray(scale, y.dtype), jnp.zeros_like(y))
    o_ref[...] = y.astype(o_ref.dtype)


# --------------------------- PE table (buffer) ----------------------------- #

def make_positional_encoding(max_len, d_model, dtype=jnp.float32):
    """Same math as the PyTorch __init__; returns (max_len, 1, d_model)."""
    position = jnp.arange(max_len, dtype=jnp.float32)[:, None]              # (L, 1)
    div_term = jnp.exp(
        jnp.arange(0, d_model, 2, dtype=jnp.float32)
        * (-math.log(10000.0) / d_model)
    )                                                                       # (ceil(D/2),)
    pe = jnp.zeros((max_len, d_model), dtype=jnp.float32)
    pe = pe.at[:, 0::2].set(jnp.sin(position * div_term))
    # slice handles odd d_model gracefully (the torch recipe would error there)
    pe = pe.at[:, 1::2].set(jnp.cos(position * div_term)[:, : d_model // 2])
    return pe[:, None, :].astype(dtype)                                     # (L, 1, D)


# ------------------------------ wrapper ------------------------------------ #

def _pick_seq_tile(seq_len, row_bytes, target_block_bytes=1 << 20):
    """Largest divisor of seq_len that is a multiple of 8 (or seq_len itself)
    and keeps one x block around ~1 MiB.  ~1 MiB blocks hit the HBM roofline
    while 4 double-buffered streams stay < 8 MiB of VMEM (safe on v5e/v6e/v7x)."""
    cap = max(1, target_block_bytes // max(row_bytes, 1))
    valid = [t for t in range(1, seq_len + 1)
             if seq_len % t == 0 and (t % 8 == 0 or t == seq_len)]
    fitting = [t for t in valid if t <= cap]
    return max(fitting) if fitting else min(valid)


def positional_encoding_forward(x, pe, *, dropout_p=0.1, train=False,
                                key=None, seq_tile=None):
    """x: (S, B, D) seq-first (module layout).  pe: (max_len, 1, D).

    Returns (S, B, D) = dropout(x + pe[:S]).
    """
    S, B, D = x.shape
    assert pe.shape[0] >= S and pe.shape[2] == D, "pe buffer too small / wrong d_model"
    BD = B * D

    p = float(dropout_p)
    apply_dropout = bool(train) and p > 0.0
    if apply_dropout and p >= 1.0:        # torch dropout(p=1) -> all zeros
        return jnp.zeros_like(x)

    # Lane-dense 2D views.  x.reshape is free (contiguous); the pe broadcast
    # over batch is materialized once here (in a real model, cache it next to
    # the pe buffer, or broadcast inside the kernel to save the read).
    x2 = x.reshape(S, BD)
    pe2 = jnp.tile(pe[:S, 0, :].astype(x.dtype), (1, B))                    # (S, BD)

    if seq_tile is None:
        seq_tile = _pick_seq_tile(S, BD * x.dtype.itemsize)
    if S % seq_tile != 0 or not (seq_tile % 8 == 0 or seq_tile == S):
        raise ValueError(f"seq_tile={seq_tile} must divide S={S} and be a "
                         f"multiple of 8 (or equal to S)")
    grid = (S // seq_tile,)
    spec = pl.BlockSpec((seq_tile, BD), lambda i: (i, 0))

    if apply_dropout:
        if key is None:
            key = jax.random.PRNGKey(0)
        bits = jax.random.bits(key, (S, BD), dtype=jnp.uint32)
        threshold = min(int(round(p * (2 ** 32))), 2 ** 32 - 1)
        kernel = functools.partial(_pe_add_dropout_kernel,
                                   threshold=threshold,
                                   scale=1.0 / (1.0 - p))
        inputs = (x2, pe2, bits)
        in_specs = [spec, spec, spec]
    else:
        kernel = _pe_add_kernel
        inputs = (x2, pe2)
        in_specs = [spec, spec]

    out2 = pl.pallas_call(
        kernel,
        out_shape=jax.ShapeDtypeStruct((S, BD), x.dtype),
        grid_spec=pltpu.PrefetchScalarGridSpec(
            num_scalar_prefetch=0,
            grid=grid,
            in_specs=in_specs,
            out_specs=spec,
        ),
        input_output_aliases={0: 0},   # x is fully overwritten
        compiler_params=pltpu.CompilerParams(
            dimension_semantics=("parallel",),   # tiles are independent
        ),
    )(*inputs)

    return out2.reshape(S, B, D)


# ------------------------------- demo -------------------------------------- #

if __name__ == "__main__":
    # Module layout is (seq, batch, d_model); d_model=100 matches the spec.
    S, B, D = 32, 2, 100
    MAX_LEN = 64
    DROPOUT_P = 0.1

    root = jax.random.PRNGKey(0)
    kx, kd = jax.random.split(root)
    x = jax.random.normal(kx, (S, B, D), dtype=jnp.float32)
    pe = make_positional_encoding(MAX_LEN, D, dtype=jnp.float32)

    # Eval mode (dropout = identity): must equal x + pe[:S] exactly.
    ref_eval = x + pe[:S]
    y_eval = jax.block_until_ready(
        positional_encoding_forward(x, pe, dropout_p=DROPOUT_P, train=False))
    assert y_eval.shape == (S, B, D)
    assert jnp.allclose(y_eval, ref_eval, atol=1e-6, rtol=1e-6), "eval-mode mismatch"

    # Train mode: deterministic given the key; exercise a multi-step grid.
    # TODO(synk): PyTorch's dropout RNG stream cannot be reproduced bit-exactly;
    # same keep-probability / inverted-dropout scaling is used instead.
    y_train = jax.block_until_ready(
        positional_encoding_forward(x, pe, dropout_p=DROPOUT_P, train=True,
                                    key=kd, seq_tile=8))
    bits_ref = jax.random.bits(kd, (S, B * D), dtype=jnp.uint32).reshape(S, B, D)
    thr = min(int(round(DROPOUT_P * (2 ** 32))), 2 ** 32 - 1)
    keep = bits_ref >= jnp.uint32(thr)
    ref_train = jnp.where(keep,
                          (x + pe[:S]) * jnp.float32(1.0 / (1.0 - DROPOUT_P)),
                          0.0)
    assert y_train.shape == (S, B, D)
    assert jnp.allclose(y_train, ref_train, atol=1e-6, rtol=1e-6), "train-mode mismatch"

    print("KERNEL_OK")
</pallas_src>

<mosaic_0001>
module attributes {stable_mosaic.version = 11 : i64} {
  func.func @_pe_add_kernel(%arg0: i32, %arg1: memref<32x200xf32, #tpu.memory_space<vmem>>, %arg2: memref<32x200xf32, #tpu.memory_space<vmem>>, %arg3: memref<32x200xf32, #tpu.memory_space<vmem>>) attributes {dimension_semantics = [#tpu.dimension_semantics<parallel>], iteration_bounds = array<i64: 1>, scalar_prefetch = 0 : i64, scratch_operands = 0 : i64, tpu.core_type = #tpu.core_type<tc>, window_params = [{transform_indices = @transform_0, window_bounds = array<i64: 32, 200>}, {transform_indices = @transform_1, window_bounds = array<i64: 32, 200>}, {transform_indices = @transform_2, window_bounds = array<i64: 32, 200>}]} {
    %c0 = arith.constant 0 : index
    %c0_0 = arith.constant 0 : index
    %0 = vector.load %arg1[%c0, %c0_0] : memref<32x200xf32, #tpu.memory_space<vmem>>, vector<32x200xf32>
    %c0_1 = arith.constant 0 : index
    %c0_2 = arith.constant 0 : index
    %1 = vector.load %arg2[%c0_1, %c0_2] : memref<32x200xf32, #tpu.memory_space<vmem>>, vector<32x200xf32>
    %2 = arith.addf %0, %1 : vector<32x200xf32>
    %c0_3 = arith.constant 0 : index
    %c0_4 = arith.constant 0 : index
    %3 = vector.load %arg3[%c0_3, %c0_4] : memref<32x200xf32, #tpu.memory_space<vmem>>, vector<32x200xf32>
    tpu.vector_store %arg3[%c0_3, %c0_4], %2 {strides = array<i32>} : memref<32x200xf32, #tpu.memory_space<vmem>>, vector<32x200xf32>,
    return
  }
  func.func @transform_0(%arg0: i32) -> (i32, i32) {
    %c0_i32 = arith.constant 0 : i32
    %c0_i32_0 = arith.constant 0 : i32
    return %arg0, %c0_i32 : i32, i32
  }
  func.func @transform_1(%arg0: i32) -> (i32, i32) {
    %c0_i32 = arith.constant 0 : i32
    %c0_i32_0 = arith.constant 0 : i32
    return %arg0, %c0_i32 : i32, i32
  }
  func.func @transform_2(%arg0: i32) -> (i32, i32) {
    %c0_i32 = arith.constant 0 : i32
    %c0_i32_0 = arith.constant 0 : i32
    return %arg0, %c0_i32 : i32, i32
  }
}

</mosaic_0001>

<bundles_post_ra>
// kernel: tpu_custom_call.1
= control target key start
LH: loop header
LB: loop body
LE: loop exit
PB: predicated region body
PF: predicated region fallthrough
CT: control target
= control target key end

     0   :  { %7 = vsyncpa [#allocation3], 0  ;;  %s205_s0 = inlined_call_operand.hbm [shape: f32[32,200], index: 0, kind: input, shape index: {}, may-alias: {0,2}]   ;;  %s206_s1 = inlined_call_operand.vmem [shape: f32[32,200], index: 1, kind: input, shape index: {}]   ;;  %s207_s2 = inlined_call_operand.hbm [shape: f32[32,200], index: 2, kind: output, shape index: {}, may-alias: {0,2}]  }
   0x1   :  { %8 = vsyncpa [#allocation4], 0  ;;  %s128_s9 = smov [#allocation2]   ;;  %s80_s13 = scalar_lea.hbm %s205_s0, 1024 }
   0x2   :  { %s14_s10 = sshll.u32 %s128_s9, 4  ;;  %p81_p0 = scmp.ne.s32.totalorder %s205_s0, %s80_s13  ;;  %s15_s10 = int_to_ptr.vmem [resolvable:$true] %s14_s10 }
   0x3   :  { %p84_p1 = scmp.lt.u32.totalorder %s80_s13, %s205_s0 }
   0x5   :  { %p86_p2 = pnand %p84_p1, %p81_p0 }
   0x7   :  { %89 = shalt.err (!%p86_p2)
}
   0x8   :  { %s90_s18 = scalar_lea.vmem %s15_s10, 1024  ;;  %p95_p4 = scmp.lt.s32.totalorder %s15_s10, %s15_s10 }
   0x9   :  { %p91_p3 = scmp.ne.s32.totalorder %s15_s10, %s90_s18  ;;  %p96_p5 = scmp.lt.s32.totalorder %s90_s18, %s90_s18 }
   0xb   :  { %p97_p6 = por %p96_p5, %p95_p4 }
   0xd   :  { %p98_p7 = pnand %p97_p6, %p91_p3 }
   0xf   :  { %101 = shalt.err (!%p98_p7)
}
  0x10   :  { %s129_s19 = smov 256   ;;  %s130_s20 = smov 16  }
  0x11   :  { %20 = dma.hbm_to_vmem [thread:$0]  %s205_s0, 1024, %s15_s10, [#allocation3], %s129_s19, %s129_s19, %s130_s20  }
  0x12   :  { %124 = dma.done.wait [#allocation3], 1024  }
  0x13   :  { %125 = vsyncadd [#allocation3], 4294966272  ;;  %v26_v0 = vld [vmem:[#allocation2] sm:$0xff]  ;;  %v27_v2 = vld [vmem:[#allocation2 + $0x8] sm:$0xff]  ;;  %vm51_vm0 = vcmask 588800   ;;  %s131_s6 = smov [#allocation5]  }
  0x14   :  { %v34_v1 = vld [vmem:[%s206_s1] sm:$0xff]  ;;  %v35_v4 = vld [vmem:[%s206_s1 + $0x8] sm:$0xff]  ;;  %v28_v5 = vld [vmem:[#allocation2 + $0x10] sm:$0xff]  ;;  %s64_s7 = sshll.u32 %s131_s6, 4  ;;  %s65_s7 = int_to_ptr.vmem [resolvable:$true] %s64_s7 }
  0x15   :  { %v42_v3 = vadd.f32 %v34_v1, %v26_v0  ;;  %v36_v6 = vld [vmem:[%s206_s1 + $0x10] sm:$0xff]  ;;  %v43_v7 = vadd.f32 %v35_v4, %v27_v2  ;;  %v29_v9 = vld [vmem:[#allocation2 + $0x18] sm:$0xff]  ;;  %v30_v11 = vld [vmem:[#allocation2 + $0x20] sm:$0xff]  ;;  %s102_s12 = scalar_lea.vmem %s65_s7, 1024  ;;  %p107_p9 = scmp.lt.s32.totalorder %s65_s7, %s65_s7 }
  0x16   :  { %v44_v8 = vadd.f32 %v36_v6, %v28_v5  ;;  %v37_v10 = vld [vmem:[%s206_s1 + $0x18] sm:$0xff]  ;;  %v38_v13 = vld [vmem:[%s206_s1 + $0x20] sm:$0xff]  ;;  %v31_v14 = vld [vmem:[#allocation2 + $0x28] sm:$0xff]  ;;  %p103_p8 = scmp.ne.s32.totalorder %s65_s7, %s102_s12  ;;  %p108_p10 = scmp.lt.s32.totalorder %s102_s12, %s102_s12 }
  0x17   :  { %50 = vst [vmem:[#allocation5] sm:$0xff] %v42_v3  ;;  %v45_v12 = vadd.f32 %v37_v10, %v29_v9  ;;  %v39_v15 = vld [vmem:[%s206_s1 + $0x28] sm:$0xff]  ;;  %52 = vst.msk [vmem:[#allocation5 + $0x8] sm:$0xff] %vm51_vm0, %v43_v7  ;;  %v46_v16 = vadd.f32 %v38_v13, %v30_v11  ;;  %v32_v18 = vld [vmem:[#allocation2 + $0x30] sm:$0xff] }
  0x18   :  { %53 = vst [vmem:[#allocation5 + $0x10] sm:$0xff] %v44_v8  ;;  %v47_v17 = vadd.f32 %v39_v15, %v31_v14  ;;  %v40_v19 = vld [vmem:[%s206_s1 + $0x30] sm:$0xff]  ;;  %v33_v20 = vld [vmem:[#allocation2 + $0x38] sm:$0xff]  ;;  %p109_p11 = por %p108_p10, %p107_p9 }
  0x19   :  { %54 = vst.msk [vmem:[#allocation5 + $0x18] sm:$0xff] %vm51_vm0, %v45_v12  ;;  %v48_v21 = vadd.f32 %v40_v19, %v32_v18  ;;  %v41_v22 = vld [vmem:[%s206_s1 + $0x38] sm:$0xff]  ;;  %55 = vst [vmem:[#allocation5 + $0x20] sm:$0xff] %v46_v16 }
  0x1a   :  { %56 = vst.msk [vmem:[#allocation5 + $0x28] sm:$0xff] %vm51_vm0, %v47_v17  ;;  %v49_v23 = vadd.f32 %v41_v22, %v33_v20  ;;  %p110_p12 = pnand %p109_p11, %p103_p8 }
  0x1b   :  { %57 = vst [vmem:[#allocation5 + $0x30] sm:$0xff] %v48_v21 }
  0x1c   :  { %58 = vst.msk [vmem:[#allocation5 + $0x38] sm:$0xff] %vm51_vm0, %v49_v23 }
  0x1d   :  { %113 = shalt.err (!%p110_p12)
}
  0x1e   :  { %s114_s15 = scalar_lea.hbm %s207_s2, 1024 }
  0x1f   :  { %p115_p13 = scmp.ne.s32.totalorder %s207_s2, %s114_s15  ;;  %p118_p0 = scmp.lt.u32.totalorder %s114_s15, %s207_s2 }
  0x21   :  { %p120_p1 = pnand %p118_p0, %p115_p13 }
  0x23   :  { %123 = shalt.err (!%p120_p1)
}
  0x24   :  { %70 = dma.vmem_to_hbm [thread:$0]  %s65_s7, 1024, %s207_s2, [#allocation4], %s129_s19, %s129_s19, %s130_s20  }
  0x25   :  { %126 = dma.done.wait [#allocation4], 1024  }
  0x26   :  { %127 = vsyncadd [#allocation4], 4294966272 }
  0x27   :  { %74 = vsyncpa [#allocation3], 1 }
  0x28   :  { %75 = vsyncpa [#allocation4], 1 }

</bundles_post_ra>
